<compile_context>
chip_gen: v7x
topology: tpu7x:2x2x1
jax: 0.10.0
libtpu: 0.0.40
codegen_flags: <defaults>
</compile_context>

<pallas_src>
import math

import jax
import jax.numpy as jnp
from jax.experimental import pallas as pl
from jax.experimental.pallas import tpu as pltpu


# ----------------------------- Pallas kernel ------------------------------ #
def bilstm_maxpool_kernel(gx_ref, whh_ref, out_ref):
    T, B, G = gx_ref.shape          # G = 8H (both directions, gate-major lanes)
    HH = G // 4                     # fused state width = 2H

    # Hoisted lane constants: tanh(x) = 2*sigmoid(2x) - 1 on the "g" gate lanes,
    # plain sigmoid elsewhere -> one EUP op over the whole (B, 8H) gate vector.
    lane = jax.lax.broadcasted_iota(jnp.int32, (B, G), 1)
    is_g = (lane >= 2 * HH) & (lane < 3 * HH)
    scale = jnp.where(is_g, 2.0, 1.0).astype(jnp.float32)   # doubles as the affine "a"
    shift = jnp.where(is_g, -1.0, 0.0).astype(jnp.float32)

    h = jnp.zeros((B, HH), jnp.float32)                 # [h_fwd | h_bwd]
    c = jnp.zeros((B, HH), jnp.float32)                 # [c_fwd | c_bwd]
    m = jnp.full((B, HH), -jnp.inf, jnp.float32)        # running max over time

    for t in range(T):  # static unroll: T is small and fixed
        gates = gx_ref[t]
        if t > 0:       # h == 0 at t == 0, so the recurrent matmul is skipped there
            # Read the weight from the ref inside the step (do not pin 16 vregs live
            # across the whole unrolled loop).
            gates = gates + jnp.dot(h, whh_ref[...],
                                    preferred_element_type=jnp.float32)
        # Single full-width transcendental, then a cheap VPU affine blend.
        act = jax.nn.sigmoid(gates * scale) * scale + shift
        i = act[:, 0 * HH:1 * HH]
        f = act[:, 1 * HH:2 * HH]
        g = act[:, 2 * HH:3 * HH]
        o = act[:, 3 * HH:4 * HH]
        c = f * c + i * g
        h = o * jnp.tanh(c)
        m = jnp.maximum(m, h)

    out_ref[...] = m                 # single final store, already [fwd | bwd] order


def bilstm_maxpool(gx, whh_cat):
    """gx: (T, B, 8H) fused gate pre-activations.  whh_cat: (2H, 8H) block-diagonal."""
    T, B, G = gx.shape
    HH = whh_cat.shape[0]            # 2H
    return pl.pallas_call(
        bilstm_maxpool_kernel,
        out_shape=jax.ShapeDtypeStruct((B, HH), jnp.float32),
        in_specs=[pl.BlockSpec(memory_space=pltpu.MemorySpace.VMEM)] * 2,
        out_specs=pl.BlockSpec(memory_space=pltpu.MemorySpace.VMEM),
    )(gx, whh_cat)


# ------------------------ One-time parameter prep -------------------------- #
def build_kernel_params(params):
    """Input-independent prep, done once at param-build time (not per forward call)."""
    H = params["w_hh_f"].shape[1]
    V = params["embedding"].shape[0]
    emb = params["embedding"].astype(jnp.float32)

    def gate_major_table(w_ih, b_ih, b_hh, direction):
        # Fused embedding -> input projection, bias folded in: (V, 4H), then spread into
        # gate-major (V, 8H) lanes with zeros in the other direction's lane slots.
        tbl = emb @ w_ih.T.astype(jnp.float32) + (b_ih + b_hh).astype(jnp.float32)
        tbl = tbl.reshape(V, 4, H)
        zeros = jnp.zeros_like(tbl)
        pair = [tbl, zeros] if direction == 0 else [zeros, tbl]
        return jnp.stack(pair, axis=2).reshape(V, 8 * H)          # (V, 8H)

    def gate_major_rows(w_hh, direction):
        # Rows of the block-diagonal recurrent weight for one direction: (H, 8H).
        rows = w_hh.astype(jnp.float32).T.reshape(H, 4, H)
        zeros = jnp.zeros_like(rows)
        pair = [rows, zeros] if direction == 0 else [zeros, rows]
        return jnp.stack(pair, axis=2).reshape(H, 8 * H)

    whh_cat = jnp.concatenate(
        [gate_major_rows(params["w_hh_f"], 0),
         gate_major_rows(params["w_hh_b"], 1)], axis=0)           # (2H, 8H)

    return {
        "table_gm_f": gate_major_table(params["w_ih_f"], params["b_ih_f"],
                                       params["b_hh_f"], 0),
        "table_gm_b": gate_major_table(params["w_ih_b"], params["b_ih_b"],
                                       params["b_hh_b"], 1),
        "whh_cat": whh_cat,
    }


# ------------------------------- Model glue -------------------------------- #
def lstm_model_forward(x_idx, kparams):
    """Equivalent of LSTMModel.forward with pool='max'.  x_idx: (B, T) int32."""
    xT = x_idx.T                                                   # (T, B) time-major
    # Fwd table is zero in bwd lanes (and vice versa), so one add fuses both directions.
    gx = kparams["table_gm_f"][xT] + kparams["table_gm_b"][xT[::-1]]   # (T, B, 8H)
    return bilstm_maxpool(gx, kparams["whh_cat"])                  # (B, 2H) [fwd | bwd]


# --------------------------- Pure-JAX reference ----------------------------- #
def reference_forward(x_idx, params):
    emb = params["embedding"][x_idx].astype(jnp.float32)        # (B, T, E)
    B, T, E = emb.shape
    H = params["w_hh_f"].shape[1]

    def run_dir(xs, wih, whh, b_ih, b_hh):
        def step(carry, xt):
            h, c = carry
            gates = xt @ wih.T + h @ whh.T + b_ih + b_hh
            i, f, g, o = jnp.split(gates, 4, axis=-1)
            c = jax.nn.sigmoid(f) * c + jax.nn.sigmoid(i) * jnp.tanh(g)
            h = jax.nn.sigmoid(o) * jnp.tanh(c)
            return (h, c), h
        init = (jnp.zeros((B, H), jnp.float32), jnp.zeros((B, H), jnp.float32))
        _, hs = jax.lax.scan(step, init, jnp.transpose(xs, (1, 0, 2)))
        return jnp.transpose(hs, (1, 0, 2))                     # (B, T, H)

    out_f = run_dir(emb, params["w_ih_f"], params["w_hh_f"],
                    params["b_ih_f"], params["b_hh_f"])
    out_b = run_dir(emb[:, ::-1, :], params["w_ih_b"], params["w_hh_b"],
                    params["b_ih_b"], params["b_hh_b"])[:, ::-1, :]
    out = jnp.concatenate([out_f, out_b], axis=-1)              # (B, T, 2H)
    return jnp.max(out, axis=1)                                 # (B, 2H)


# ----------------------------------- main ----------------------------------- #
if __name__ == "__main__":
    VOCAB = 50      # input_size
    E = 64          # num_inputs (embedding dim)
    H = 32          # hidden_size
    B, T = 2, 8

    key = jax.random.PRNGKey(0)
    ks = jax.random.split(key, 12)
    k = 1.0 / math.sqrt(H)          # PyTorch LSTM default init: U(-1/sqrt(H), 1/sqrt(H))

    params = {
        "embedding": jax.random.normal(ks[0], (VOCAB, E), jnp.float32),   # nn.Embedding ~ N(0,1)
        "w_ih_f": jax.random.uniform(ks[1], (4 * H, E), jnp.float32, -k, k),
        "w_hh_f": jax.random.uniform(ks[2], (4 * H, H), jnp.float32, -k, k),
        "b_ih_f": jax.random.uniform(ks[3], (4 * H,), jnp.float32, -k, k),
        "b_hh_f": jax.random.uniform(ks[4], (4 * H,), jnp.float32, -k, k),
        "w_ih_b": jax.random.uniform(ks[5], (4 * H, E), jnp.float32, -k, k),
        "w_hh_b": jax.random.uniform(ks[6], (4 * H, H), jnp.float32, -k, k),
        "b_ih_b": jax.random.uniform(ks[7], (4 * H,), jnp.float32, -k, k),
        "b_hh_b": jax.random.uniform(ks[8], (4 * H,), jnp.float32, -k, k),
    }
    x_idx = jax.random.randint(ks[9], (B, T), 0, VOCAB, dtype=jnp.int32)

    kparams = jax.block_until_ready(build_kernel_params(params))   # one-time prep

    out = jax.block_until_ready(lstm_model_forward(x_idx, kparams))
    ref = jax.block_until_ready(reference_forward(x_idx, params))

    assert out.shape == (B, 2 * H), out.shape
    assert jnp.allclose(out, ref, atol=1e-3, rtol=1e-3), float(jnp.max(jnp.abs(out - ref)))
    print("KERNEL_OK")
</pallas_src>

<mosaic_0001>
module attributes {stable_mosaic.version = 11 : i64} {
  func.func @bilstm_maxpool_kernel(%arg0: memref<8x2x256xf32, #tpu.memory_space<vmem>>, %arg1: memref<64x256xf32, #tpu.memory_space<vmem>>, %arg2: memref<2x64xf32, #tpu.memory_space<vmem>>) attributes {dimension_semantics = [], scalar_prefetch = 0 : i64, scratch_operands = 0 : i64, tpu.core_type = #tpu.core_type<tc>} {
    %0 = tpu.iota {dimensions = array<i32: 1>} : vector<2x256xi32>
    %c128_i32 = arith.constant 128 : i32
    %1 = vector.broadcast %c128_i32 : i32 to vector<2x256xi32>
    %2 = arith.cmpi sge, %0, %1 : vector<2x256xi32>
    %c192_i32 = arith.constant 192 : i32
    %3 = vector.broadcast %c192_i32 : i32 to vector<2x256xi32>
    %4 = arith.cmpi slt, %0, %3 : vector<2x256xi32>
    %5 = arith.andi %2, %4 : vector<2x256xi1>
    %cst = arith.constant 2.000000e+00 : f32
    %cst_0 = arith.constant 1.000000e+00 : f32
    %6 = vector.broadcast %cst : f32 to vector<2x256xf32>
    %7 = vector.broadcast %cst_0 : f32 to vector<2x256xf32>
    %8 = arith.select %5, %6, %7 : vector<2x256xi1>, vector<2x256xf32>
    %cst_1 = arith.constant -1.000000e+00 : f32
    %cst_2 = arith.constant 0.000000e+00 : f32
    %9 = vector.broadcast %cst_1 : f32 to vector<2x256xf32>
    %10 = vector.broadcast %cst_2 : f32 to vector<2x256xf32>
    %11 = arith.select %5, %9, %10 : vector<2x256xi1>, vector<2x256xf32>
    %cst_3 = arith.constant 0.000000e+00 : f32
    %12 = vector.broadcast %cst_3 : f32 to vector<2x64xf32>
    %cst_4 = arith.constant 0xFF800000 : f32
    %13 = vector.broadcast %cst_4 : f32 to vector<2x64xf32>
    %c0 = arith.constant 0 : index
    %c0_5 = arith.constant 0 : index
    %c0_6 = arith.constant 0 : index
    %14 = vector.load %arg0[%c0, %c0_5, %c0_6] : memref<8x2x256xf32, #tpu.memory_space<vmem>>, vector<1x2x256xf32>
    %15 = vector.shape_cast %14 : vector<1x2x256xf32> to vector<2x256xf32>
    %16 = arith.mulf %15, %8 : vector<2x256xf32>
    %17 = arith.negf %16 : vector<2x256xf32>
    %18 = math.exp %17 : vector<2x256xf32>
    %cst_7 = arith.constant 1.000000e+00 : f32
    %19 = vector.broadcast %cst_7 : f32 to vector<2x256xf32>
    %20 = arith.addf %19, %18 : vector<2x256xf32>
    %21 = arith.divf %19, %20 : vector<2x256xf32>
    %22 = arith.mulf %21, %8 : vector<2x256xf32>
    %23 = arith.addf %22, %11 : vector<2x256xf32>
    %24 = vector.extract_strided_slice %23 {offsets = [0, 0], sizes = [2, 64], strides = [1, 1]} : vector<2x256xf32> to vector<2x64xf32>
    %25 = vector.extract_strided_slice %23 {offsets = [0, 64], sizes = [2, 64], strides = [1, 1]} : vector<2x256xf32> to vector<2x64xf32>
    %26 = vector.extract_strided_slice %23 {offsets = [0, 128], sizes = [2, 64], strides = [1, 1]} : vector<2x256xf32> to vector<2x64xf32>
    %27 = vector.extract_strided_slice %23 {offsets = [0, 192], sizes = [2, 64], strides = [1, 1]} : vector<2x256xf32> to vector<2x64xf32>
    %28 = arith.mulf %25, %12 : vector<2x64xf32>
    %29 = arith.mulf %24, %26 : vector<2x64xf32>
    %30 = arith.addf %28, %29 : vector<2x64xf32>
    %31 = math.tanh %30 : vector<2x64xf32>
    %32 = arith.mulf %27, %31 : vector<2x64xf32>
    %33 = arith.maximumf %13, %32 : vector<2x64xf32>
    %c1 = arith.constant 1 : index
    %c0_8 = arith.constant 0 : index
    %c0_9 = arith.constant 0 : index
    %34 = vector.load %arg0[%c1, %c0_8, %c0_9] : memref<8x2x256xf32, #tpu.memory_space<vmem>>, vector<1x2x256xf32>
    %35 = vector.shape_cast %34 : vector<1x2x256xf32> to vector<2x256xf32>
    %c0_10 = arith.constant 0 : index
    %c0_11 = arith.constant 0 : index
    %36 = vector.load %arg1[%c0_10, %c0_11] : memref<64x256xf32, #tpu.memory_space<vmem>>, vector<64x256xf32>
    %cst_12 = arith.constant dense<0.000000e+00> : vector<2x256xf32>
    %37 = tpu.matmul %32, %36, %cst_12 {dimension_numbers = #tpu.dot_dimension_numbers<[1], [0], [0], [1], [0, 0, 1, 1], [], []>} : vector<2x64xf32>, vector<64x256xf32>, vector<2x256xf32> -> vector<2x256xf32>
    %38 = arith.addf %35, %37 : vector<2x256xf32>
    %39 = arith.mulf %38, %8 : vector<2x256xf32>
    %40 = arith.negf %39 : vector<2x256xf32>
    %41 = math.exp %40 : vector<2x256xf32>
    %cst_13 = arith.constant 1.000000e+00 : f32
    %42 = vector.broadcast %cst_13 : f32 to vector<2x256xf32>
    %43 = arith.addf %42, %41 : vector<2x256xf32>
    %44 = arith.divf %42, %43 : vector<2x256xf32>
    %45 = arith.mulf %44, %8 : vector<2x256xf32>
    %46 = arith.addf %45, %11 : vector<2x256xf32>
    %47 = vector.extract_strided_slice %46 {offsets = [0, 0], sizes = [2, 64], strides = [1, 1]} : vector<2x256xf32> to vector<2x64xf32>
    %48 = vector.extract_strided_slice %46 {offsets = [0, 64], sizes = [2, 64], strides = [1, 1]} : vector<2x256xf32> to vector<2x64xf32>
    %49 = vector.extract_strided_slice %46 {offsets = [0, 128], sizes = [2, 64], strides = [1, 1]} : vector<2x256xf32> to vector<2x64xf32>
    %50 = vector.extract_strided_slice %46 {offsets = [0, 192], sizes = [2, 64], strides = [1, 1]} : vector<2x256xf32> to vector<2x64xf32>
    %51 = arith.mulf %48, %30 : vector<2x64xf32>
    %52 = arith.mulf %47, %49 : vector<2x64xf32>
    %53 = arith.addf %51, %52 : vector<2x64xf32>
    %54 = math.tanh %53 : vector<2x64xf32>
    %55 = arith.mulf %50, %54 : vector<2x64xf32>
    %56 = arith.maximumf %33, %55 : vector<2x64xf32>
    %c2 = arith.constant 2 : index
    %c0_14 = arith.constant 0 : index
    %c0_15 = arith.constant 0 : index
    %57 = vector.load %arg0[%c2, %c0_14, %c0_15] : memref<8x2x256xf32, #tpu.memory_space<vmem>>, vector<1x2x256xf32>
    %58 = vector.shape_cast %57 : vector<1x2x256xf32> to vector<2x256xf32>
    %c0_16 = arith.constant 0 : index
    %c0_17 = arith.constant 0 : index
    %59 = vector.load %arg1[%c0_16, %c0_17] : memref<64x256xf32, #tpu.memory_space<vmem>>, vector<64x256xf32>
    %cst_18 = arith.constant dense<0.000000e+00> : vector<2x256xf32>
    %60 = tpu.matmul %55, %59, %cst_18 {dimension_numbers = #tpu.dot_dimension_numbers<[1], [0], [0], [1], [0, 0, 1, 1], [], []>} : vector<2x64xf32>, vector<64x256xf32>, vector<2x256xf32> -> vector<2x256xf32>
    %61 = arith.addf %58, %60 : vector<2x256xf32>
    %62 = arith.mulf %61, %8 : vector<2x256xf32>
    %63 = arith.negf %62 : vector<2x256xf32>
    %64 = math.exp %63 : vector<2x256xf32>
    %cst_19 = arith.constant 1.000000e+00 : f32
    %65 = vector.broadcast %cst_19 : f32 to vector<2x256xf32>
    %66 = arith.addf %65, %64 : vector<2x256xf32>
    %67 = arith.divf %65, %66 : vector<2x256xf32>
    %68 = arith.mulf %67, %8 : vector<2x256xf32>
    %69 = arith.addf %68, %11 : vector<2x256xf32>
    %70 = vector.extract_strided_slice %69 {offsets = [0, 0], sizes = [2, 64], strides = [1, 1]} : vector<2x256xf32> to vector<2x64xf32>
    %71 = vector.extract_strided_slice %69 {offsets = [0, 64], sizes = [2, 64], strides = [1, 1]} : vector<2x256xf32> to vector<2x64xf32>
    %72 = vector.extract_strided_slice %69 {offsets = [0, 128], sizes = [2, 64], strides = [1, 1]} : vector<2x256xf32> to vector<2x64xf32>
    %73 = vector.extract_strided_slice %69 {offsets = [0, 192], sizes = [2, 64], strides = [1, 1]} : vector<2x256xf32> to vector<2x64xf32>
    %74 = arith.mulf %71, %53 : vector<2x64xf32>
    %75 = arith.mulf %70, %72 : vector<2x64xf32>
    %76 = arith.addf %74, %75 : vector<2x64xf32>
    %77 = math.tanh %76 : vector<2x64xf32>
    %78 = arith.mulf %73, %77 : vector<2x64xf32>
    %79 = arith.maximumf %56, %78 : vector<2x64xf32>
    %c3 = arith.constant 3 : index
    %c0_20 = arith.constant 0 : index
    %c0_21 = arith.constant 0 : index
    %80 = vector.load %arg0[%c3, %c0_20, %c0_21] : memref<8x2x256xf32, #tpu.memory_space<vmem>>, vector<1x2x256xf32>
    %81 = vector.shape_cast %80 : vector<1x2x256xf32> to vector<2x256xf32>
    %c0_22 = arith.constant 0 : index
    %c0_23 = arith.constant 0 : index
    %82 = vector.load %arg1[%c0_22, %c0_23] : memref<64x256xf32, #tpu.memory_space<vmem>>, vector<64x256xf32>
    %cst_24 = arith.constant dense<0.000000e+00> : vector<2x256xf32>
    %83 = tpu.matmul %78, %82, %cst_24 {dimension_numbers = #tpu.dot_dimension_numbers<[1], [0], [0], [1], [0, 0, 1, 1], [], []>} : vector<2x64xf32>, vector<64x256xf32>, vector<2x256xf32> -> vector<2x256xf32>
    %84 = arith.addf %81, %83 : vector<2x256xf32>
    %85 = arith.mulf %84, %8 : vector<2x256xf32>
    %86 = arith.negf %85 : vector<2x256xf32>
    %87 = math.exp %86 : vector<2x256xf32>
    %cst_25 = arith.constant 1.000000e+00 : f32
    %88 = vector.broadcast %cst_25 : f32 to vector<2x256xf32>
    %89 = arith.addf %88, %87 : vector<2x256xf32>
    %90 = arith.divf %88, %89 : vector<2x256xf32>
    %91 = arith.mulf %90, %8 : vector<2x256xf32>
    %92 = arith.addf %91, %11 : vector<2x256xf32>
    %93 = vector.extract_strided_slice %92 {offsets = [0, 0], sizes = [2, 64], strides = [1, 1]} : vector<2x256xf32> to vector<2x64xf32>
    %94 = vector.extract_strided_slice %92 {offsets = [0, 64], sizes = [2, 64], strides = [1, 1]} : vector<2x256xf32> to vector<2x64xf32>
    %95 = vector.extract_strided_slice %92 {offsets = [0, 128], sizes = [2, 64], strides = [1, 1]} : vector<2x256xf32> to vector<2x64xf32>
    %96 = vector.extract_strided_slice %92 {offsets = [0, 192], sizes = [2, 64], strides = [1, 1]} : vector<2x256xf32> to vector<2x64xf32>
    %97 = arith.mulf %94, %76 : vector<2x64xf32>
    %98 = arith.mulf %93, %95 : vector<2x64xf32>
    %99 = arith.addf %97, %98 : vector<2x64xf32>
    %100 = math.tanh %99 : vector<2x64xf32>
    %101 = arith.mulf %96, %100 : vector<2x64xf32>
    %102 = arith.maximumf %79, %101 : vector<2x64xf32>
    %c4 = arith.constant 4 : index
    %c0_26 = arith.constant 0 : index
    %c0_27 = arith.constant 0 : index
    %103 = vector.load %arg0[%c4, %c0_26, %c0_27] : memref<8x2x256xf32, #tpu.memory_space<vmem>>, vector<1x2x256xf32>
    %104 = vector.shape_cast %103 : vector<1x2x256xf32> to vector<2x256xf32>
    %c0_28 = arith.constant 0 : index
    %c0_29 = arith.constant 0 : index
    %105 = vector.load %arg1[%c0_28, %c0_29] : memref<64x256xf32, #tpu.memory_space<vmem>>, vector<64x256xf32>
    %cst_30 = arith.constant dense<0.000000e+00> : vector<2x256xf32>
    %106 = tpu.matmul %101, %105, %cst_30 {dimension_numbers = #tpu.dot_dimension_numbers<[1], [0], [0], [1], [0, 0, 1, 1], [], []>} : vector<2x64xf32>, vector<64x256xf32>, vector<2x256xf32> -> vector<2x256xf32>
    %107 = arith.addf %104, %106 : vector<2x256xf32>
    %108 = arith.mulf %107, %8 : vector<2x256xf32>
    %109 = arith.negf %108 : vector<2x256xf32>
    %110 = math.exp %109 : vector<2x256xf32>
    %cst_31 = arith.constant 1.000000e+00 : f32
    %111 = vector.broadcast %cst_31 : f32 to vector<2x256xf32>
    %112 = arith.addf %111, %110 : vector<2x256xf32>
    %113 = arith.divf %111, %112 : vector<2x256xf32>
    %114 = arith.mulf %113, %8 : vector<2x256xf32>
    %115 = arith.addf %114, %11 : vector<2x256xf32>
    %116 = vector.extract_strided_slice %115 {offsets = [0, 0], sizes = [2, 64], strides = [1, 1]} : vector<2x256xf32> to vector<2x64xf32>
    %117 = vector.extract_strided_slice %115 {offsets = [0, 64], sizes = [2, 64], strides = [1, 1]} : vector<2x256xf32> to vector<2x64xf32>
    %118 = vector.extract_strided_slice %115 {offsets = [0, 128], sizes = [2, 64], strides = [1, 1]} : vector<2x256xf32> to vector<2x64xf32>
    %119 = vector.extract_strided_slice %115 {offsets = [0, 192], sizes = [2, 64], strides = [1, 1]} : vector<2x256xf32> to vector<2x64xf32>
    %120 = arith.mulf %117, %99 : vector<2x64xf32>
    %121 = arith.mulf %116, %118 : vector<2x64xf32>
    %122 = arith.addf %120, %121 : vector<2x64xf32>
    %123 = math.tanh %122 : vector<2x64xf32>
    %124 = arith.mulf %119, %123 : vector<2x64xf32>
    %125 = arith.maximumf %102, %124 : vector<2x64xf32>
    %c5 = arith.constant 5 : index
    %c0_32 = arith.constant 0 : index
    %c0_33 = arith.constant 0 : index
    %126 = vector.load %arg0[%c5, %c0_32, %c0_33] : memref<8x2x256xf32, #tpu.memory_space<vmem>>, vector<1x2x256xf32>
    %127 = vector.shape_cast %126 : vector<1x2x256xf32> to vector<2x256xf32>
    %c0_34 = arith.constant 0 : index
    %c0_35 = arith.constant 0 : index
    %128 = vector.load %arg1[%c0_34, %c0_35] : memref<64x256xf32, #tpu.memory_space<vmem>>, vector<64x256xf32>
    %cst_36 = arith.constant dense<0.000000e+00> : vector<2x256xf32>
    %129 = tpu.matmul %124, %128, %cst_36 {dimension_numbers = #tpu.dot_dimension_numbers<[1], [0], [0], [1], [0, 0, 1, 1], [], []>} : vector<2x64xf32>, vector<64x256xf32>, vector<2x256xf32> -> vector<2x256xf32>
    %130 = arith.addf %127, %129 : vector<2x256xf32>
    %131 = arith.mulf %130, %8 : vector<2x256xf32>
    %132 = arith.negf %131 : vector<2x256xf32>
    %133 = math.exp %132 : vector<2x256xf32>
    %cst_37 = arith.constant 1.000000e+00 : f32
    %134 = vector.broadcast %cst_37 : f32 to vector<2x256xf32>
    %135 = arith.addf %134, %133 : vector<2x256xf32>
    %136 = arith.divf %134, %135 : vector<2x256xf32>
    %137 = arith.mulf %136, %8 : vector<2x256xf32>
    %138 = arith.addf %137, %11 : vector<2x256xf32>
    %139 = vector.extract_strided_slice %138 {offsets = [0, 0], sizes = [2, 64], strides = [1, 1]} : vector<2x256xf32> to vector<2x64xf32>
    %140 = vector.extract_strided_slice %138 {offsets = [0, 64], sizes = [2, 64], strides = [1, 1]} : vector<2x256xf32> to vector<2x64xf32>
    %141 = vector.extract_strided_slice %138 {offsets = [0, 128], sizes = [2, 64], strides = [1, 1]} : vector<2x256xf32> to vector<2x64xf32>
    %142 = vector.extract_strided_slice %138 {offsets = [0, 192], sizes = [2, 64], strides = [1, 1]} : vector<2x256xf32> to vector<2x64xf32>
    %143 = arith.mulf %140, %122 : vector<2x64xf32>
    %144 = arith.mulf %139, %141 : vector<2x64xf32>
    %145 = arith.addf %143, %144 : vector<2x64xf32>
    %146 = math.tanh %145 : vector<2x64xf32>
    %147 = arith.mulf %142, %146 : vector<2x64xf32>
    %148 = arith.maximumf %125, %147 : vector<2x64xf32>
    %c6 = arith.constant 6 : index
    %c0_38 = arith.constant 0 : index
    %c0_39 = arith.constant 0 : index
    %149 = vector.load %arg0[%c6, %c0_38, %c0_39] : memref<8x2x256xf32, #tpu.memory_space<vmem>>, vector<1x2x256xf32>
    %150 = vector.shape_cast %149 : vector<1x2x256xf32> to vector<2x256xf32>
    %c0_40 = arith.constant 0 : index
    %c0_41 = arith.constant 0 : index
    %151 = vector.load %arg1[%c0_40, %c0_41] : memref<64x256xf32, #tpu.memory_space<vmem>>, vector<64x256xf32>
    %cst_42 = arith.constant dense<0.000000e+00> : vector<2x256xf32>
    %152 = tpu.matmul %147, %151, %cst_42 {dimension_numbers = #tpu.dot_dimension_numbers<[1], [0], [0], [1], [0, 0, 1, 1], [], []>} : vector<2x64xf32>, vector<64x256xf32>, vector<2x256xf32> -> vector<2x256xf32>
    %153 = arith.addf %150, %152 : vector<2x256xf32>
    %154 = arith.mulf %153, %8 : vector<2x256xf32>
    %155 = arith.negf %154 : vector<2x256xf32>
    %156 = math.exp %155 : vector<2x256xf32>
    %cst_43 = arith.constant 1.000000e+00 : f32
    %157 = vector.broadcast %cst_43 : f32 to vector<2x256xf32>
    %158 = arith.addf %157, %156 : vector<2x256xf32>
    %159 = arith.divf %157, %158 : vector<2x256xf32>
    %160 = arith.mulf %159, %8 : vector<2x256xf32>
    %161 = arith.addf %160, %11 : vector<2x256xf32>
    %162 = vector.extract_strided_slice %161 {offsets = [0, 0], sizes = [2, 64], strides = [1, 1]} : vector<2x256xf32> to vector<2x64xf32>
    %163 = vector.extract_strided_slice %161 {offsets = [0, 64], sizes = [2, 64], strides = [1, 1]} : vector<2x256xf32> to vector<2x64xf32>
    %164 = vector.extract_strided_slice %161 {offsets = [0, 128], sizes = [2, 64], strides = [1, 1]} : vector<2x256xf32> to vector<2x64xf32>
    %165 = vector.extract_strided_slice %161 {offsets = [0, 192], sizes = [2, 64], strides = [1, 1]} : vector<2x256xf32> to vector<2x64xf32>
    %166 = arith.mulf %163, %145 : vector<2x64xf32>
    %167 = arith.mulf %162, %164 : vector<2x64xf32>
    %168 = arith.addf %166, %167 : vector<2x64xf32>
    %169 = math.tanh %168 : vector<2x64xf32>
    %170 = arith.mulf %165, %169 : vector<2x64xf32>
    %171 = arith.maximumf %148, %170 : vector<2x64xf32>
    %c7 = arith.constant 7 : index
    %c0_44 = arith.constant 0 : index
    %c0_45 = arith.constant 0 : index
    %172 = vector.load %arg0[%c7, %c0_44, %c0_45] : memref<8x2x256xf32, #tpu.memory_space<vmem>>, vector<1x2x256xf32>
    %173 = vector.shape_cast %172 : vector<1x2x256xf32> to vector<2x256xf32>
    %c0_46 = arith.constant 0 : index
    %c0_47 = arith.constant 0 : index
    %174 = vector.load %arg1[%c0_46, %c0_47] : memref<64x256xf32, #tpu.memory_space<vmem>>, vector<64x256xf32>
    %cst_48 = arith.constant dense<0.000000e+00> : vector<2x256xf32>
    %175 = tpu.matmul %170, %174, %cst_48 {dimension_numbers = #tpu.dot_dimension_numbers<[1], [0], [0], [1], [0, 0, 1, 1], [], []>} : vector<2x64xf32>, vector<64x256xf32>, vector<2x256xf32> -> vector<2x256xf32>
    %176 = arith.addf %173, %175 : vector<2x256xf32>
    %177 = arith.mulf %176, %8 : vector<2x256xf32>
    %178 = arith.negf %177 : vector<2x256xf32>
    %179 = math.exp %178 : vector<2x256xf32>
    %cst_49 = arith.constant 1.000000e+00 : f32
    %180 = vector.broadcast %cst_49 : f32 to vector<2x256xf32>
    %181 = arith.addf %180, %179 : vector<2x256xf32>
    %182 = arith.divf %180, %181 : vector<2x256xf32>
    %183 = arith.mulf %182, %8 : vector<2x256xf32>
    %184 = arith.addf %183, %11 : vector<2x256xf32>
    %185 = vector.extract_strided_slice %184 {offsets = [0, 0], sizes = [2, 64], strides = [1, 1]} : vector<2x256xf32> to vector<2x64xf32>
    %186 = vector.extract_strided_slice %184 {offsets = [0, 64], sizes = [2, 64], strides = [1, 1]} : vector<2x256xf32> to vector<2x64xf32>
    %187 = vector.extract_strided_slice %184 {offsets = [0, 128], sizes = [2, 64], strides = [1, 1]} : vector<2x256xf32> to vector<2x64xf32>
    %188 = vector.extract_strided_slice %184 {offsets = [0, 192], sizes = [2, 64], strides = [1, 1]} : vector<2x256xf32> to vector<2x64xf32>
    %189 = arith.mulf %186, %168 : vector<2x64xf32>
    %190 = arith.mulf %185, %187 : vector<2x64xf32>
    %191 = arith.addf %189, %190 : vector<2x64xf32>
    %192 = math.tanh %191 : vector<2x64xf32>
    %193 = arith.mulf %188, %192 : vector<2x64xf32>
    %194 = arith.maximumf %171, %193 : vector<2x64xf32>
    %c0_50 = arith.constant 0 : index
    %c0_51 = arith.constant 0 : index
    %195 = vector.load %arg2[%c0_50, %c0_51] : memref<2x64xf32, #tpu.memory_space<vmem>>, vector<2x64xf32>
    tpu.vector_store %arg2[%c0_50, %c0_51], %194 {strides = array<i32>} : memref<2x64xf32, #tpu.memory_space<vmem>>, vector<2x64xf32>,
    return
  }
}

</mosaic_0001>

<bundles_post_ra>
// kernel: tpu_custom_call.1
= control target key start
LH: loop header
LB: loop body
LE: loop exit
PB: predicated region body
PF: predicated region fallthrough
CT: control target
= control target key end

     0   :  { %7 = vsyncpa [#allocation3], 0  ;;  %s1447_s0 = inlined_call_operand.hbm [shape: f32[8,2,256], index: 0, kind: input, shape index: {}]   ;;  %s1448_s1 = inlined_call_operand.hbm [shape: f32[64,256], index: 1, kind: input, shape index: {}]   ;;  %s1449_s2 = inlined_call_operand.hbm [shape: f32[2,64], index: 2, kind: output, shape index: {}]  }
   0x1   :  { %8 = vsyncpa [#allocation6], 0 }
   0x2   :  { %9 = vsyncpa [#allocation4], 0  ;;  %s1223_s9 = smov [#allocation2]   ;;  %s1151_s13 = scalar_lea.hbm %s1447_s0, 512 }
   0x3   :  { %s15_s10 = sshll.u32 %s1223_s9, 4  ;;  %p1152_p0 = scmp.ne.s32.totalorder %s1447_s0, %s1151_s13  ;;  %s16_s10 = int_to_ptr.vmem [resolvable:$true] %s15_s10 }
   0x4   :  { %p1155_p1 = scmp.lt.u32.totalorder %s1151_s13, %s1447_s0 }
   0x6   :  { %p1157_p2 = pnand %p1155_p1, %p1152_p0 }
   0x8   :  { %1160 = shalt.err (!%p1157_p2)
}
   0x9   :  { %s1161_s18 = scalar_lea.vmem %s16_s10, 512  ;;  %p1166_p4 = scmp.lt.s32.totalorder %s16_s10, %s16_s10 }
   0xa   :  { %p1162_p3 = scmp.ne.s32.totalorder %s16_s10, %s1161_s18  ;;  %p1167_p5 = scmp.lt.s32.totalorder %s1161_s18, %s1161_s18 }
   0xc   :  { %p1168_p6 = por %p1167_p5, %p1166_p4 }
   0xe   :  { %p1169_p7 = pnand %p1168_p6, %p1162_p3 }
  0x10   :  { %1172 = shalt.err (!%p1169_p7)
}
  0x11   :  { %s1224_s19 = smov 64   ;;  %s1225_s20 = smov 4  }
  0x12   :  { %21 = dma.hbm_to_vmem [thread:$0]  %s1447_s0, 512, %s16_s10, [#allocation3], %s1224_s19, %s1224_s19, %s1225_s20  }
  0x13   :  { %s1226_s23 = smov [#allocation5]   ;;  %s1173_s27 = scalar_lea.hbm %s1448_s1, 2048 }
  0x14   :  { %s27_s24 = sshll.u32 %s1226_s23, 4  ;;  %p1174_p8 = scmp.ne.s32.totalorder %s1448_s1, %s1173_s27  ;;  %s28_s24 = int_to_ptr.vmem [resolvable:$true] %s27_s24 }
  0x15   :  { %p1177_p9 = scmp.lt.u32.totalorder %s1173_s27, %s1448_s1 }
  0x17   :  { %p1179_p10 = pnand %p1177_p9, %p1174_p8 }
  0x19   :  { %1182 = shalt.err (!%p1179_p10)
}
  0x1a   :  { %s1183_s4 = scalar_lea.vmem %s28_s24, 2048  ;;  %p1188_p12 = scmp.lt.s32.totalorder %s28_s24, %s28_s24 }
  0x1b   :  { %p1184_p11 = scmp.ne.s32.totalorder %s28_s24, %s1183_s4  ;;  %p1189_p13 = scmp.lt.s32.totalorder %s1183_s4, %s1183_s4 }
  0x1d   :  { %p1190_p0 = por %p1189_p13, %p1188_p12 }
  0x1f   :  { %p1191_p1 = pnand %p1190_p0, %p1184_p11 }
  0x21   :  { %1194 = shalt.err (!%p1191_p1)
}
  0x22   :  { %s1227_s0 = smov 256   ;;  %s1228_s5 = smov 16  }
  0x23   :  { %33 = dma.hbm_to_vmem [thread:$0]  %s1448_s1, 2048, %s28_s24, [#allocation6], %s1227_s0, %s1227_s0, %s1228_s5  }
  0x24   :  { %1217 = dma.done.wait [#allocation3], 512  }
  0x25   :  { %1218 = vsyncadd [#allocation3], 4294966784 }
  0x26   :  { %1219 = dma.done.wait [#allocation6], 2048  }
  0x27   :  { %1220 = vsyncadd [#allocation6], 4294965248  ;;  %v40_v0 = vlaneseq  ;;  %v1229_v1 = vmov 1983009808   ;;  %v1230_v3 = vmov 0.0   ;;  %v1231_v9 = vmov 1.0  }
  0x28   :  { %v58_v2 = vunpack.c.l.s4 %v1229_v1  ;;  %191 = vmatprep.mubr.f32.mxu0 %v1230_v3  ;;  %309 = vmatprep.mubr.f32.mxu1 %v1230_v3  ;;  %v53_v12 = vld [vmem:[#allocation2] sm:$0xf]  ;;  %v108_v26 = vld [vmem:[#allocation5 + $0x8] sm:$0xff]  ;;  %v110_v27 = vld [vmem:[#allocation5 + $0x18] sm:$0xff]  ;;  %vm123_vm1 = vcmask 523264   ;;  %s1232_s1 = smov [#allocation7]  }
  0x29   :  { %v41_v4 = vand.u32 127, %v40_v0  ;;  %v61_v5 = vshrl.u32 %v40_v0, 7  ;;  %v107_v28 = vld [vmem:[#allocation5] sm:$0xff]  ;;  %v1290_v29 = vpack.c.bf16 %v110_v27, %v108_v26  ;;  %v109_v30 = vld [vmem:[#allocation5 + $0x10] sm:$0xff]  ;;  %v112_v31 = vld [vmem:[#allocation5 + $0x28] sm:$0xff]  ;;  %s956_s8 = sshll.u32 %s1232_s1, 4  ;;  %s957_s8 = int_to_ptr.vmem [resolvable:$true] %s956_s8 }
  0x2a   :  { %v59_v6 = vunpack.c.0.s8 %v58_v2  ;;  %v114_v32 = vld [vmem:[#allocation5 + $0x38] sm:$0xff]  ;;  %v1292_v33 = vpack.c.bf16 %v109_v30, %v107_v28  ;;  %v111_v35 = vld [vmem:[#allocation5 + $0x20] sm:$0xff]  ;;  %v113_v36 = vld [vmem:[#allocation5 + $0x30] sm:$0xff]  ;;  %vm948_vm2 = vcmask 517120   ;;  %s1195_s9 = scalar_lea.vmem %s957_s8, 32  ;;  %p1200_p3 = scmp.lt.s32.totalorder %s957_s8, %s957_s8 }
  0x2b   :  { %v42_v7 = vadd.s32 128, %v41_v4  ;;  %v1294_v34 = vpack.c.bf16 %v114_v32, %v112_v31  ;;  %v116_v37 = vld [vmem:[#allocation5 + $0x48] sm:$0xff]  ;;  %982 = vmatprep.subr.bf16.mxu0 %v1290_v29  ;;  %v118_v38 = vld [vmem:[#allocation5 + $0x58] sm:$0xff]  ;;  %998 = vmatprep.subr.bf16.mxu1 %v1290_v29  ;;  %v1300_v39 = vpack.c.bf16 %v113_v36, %v111_v35  ;;  %v115_v41 = vld [vmem:[#allocation5 + $0x40] sm:$0xff]  ;;  %p1196_p2 = scmp.ne.s32.totalorder %s957_s8, %s1195_s9  ;;  %p1201_p4 = scmp.lt.s32.totalorder %s1195_s9, %s1195_s9 }
  0x2c   :  { %v1276_v8 = vsub.s32 %v59_v6, %v61_v5  ;;  %984 = vmatpush1.bf16.msra.mxu0 %v1292_v33  ;;  %v1303_v40 = vpack.c.bf16 %v118_v38, %v116_v37  ;;  %v117_v42 = vld [vmem:[#allocation5 + $0x50] sm:$0xff]  ;;  %1000 = vmatpush1.bf16.msra.mxu1 %v1292_v33  ;;  %v120_v43 = vld [vmem:[#allocation5 + $0x68] sm:$0xff]  ;;  %v122_v44 = vld [vmem:[#allocation5 + $0x78] sm:$0xff] }
  0x2d   :  { %vm46_vm0 = vcmp.lt.s32.totalorder %v42_v7, 192  ;;  %986 = vmatprep.subr.bf16.mxu0 %v1294_v34  ;;  %1002 = vmatprep.subr.bf16.mxu1 %v1294_v34  ;;  %v1308_v45 = vpack.c.bf16 %v117_v42, %v115_v41  ;;  %v1311_v46 = vpack.c.bf16 %v122_v44, %v120_v43  ;;  %v119_v47 = vld [vmem:[#allocation5 + $0x60] sm:$0xff]  ;;  %v121_v48 = vld [vmem:[#allocation5 + $0x70] sm:$0xff]  ;;  %p1202_p5 = por %p1201_p4, %p1200_p3 }
  0x2e   :  { %v50_v10 = vsel %vm46_vm0, 2.0, %v1231_v9  ;;  %v52_v18 = vsel %vm46_vm0, -1.0, %v1230_v3  ;;  %v1316_v49 = vpack.c.bf16 %v121_v48, %v119_v47  ;;  %v106_v61 = vld [vmem:[#allocation2 + $0x4] sm:$0xf] }
  0x2f   :  { %v56_v11 = vcombine.low %v1231_v9, %v50_v10  ;;  %v75_v19 = vcombine.low %v1230_v3, %v52_v18  ;;  %p1203_p6 = pnand %p1202_p5, %p1196_p2 }
  0x30   :  { %988 = vmatpush1.bf16.msra.mxu0 %v1300_v39  ;;  %1004 = vmatpush1.bf16.msra.mxu1 %v1300_v39 }
  0x31   :  { %v1279_v13 = vrot.slane %v56_v11, %v1276_v8  ;;  %v1285_v20 = vrot.slane %v75_v19, %v1276_v8  ;;  %990 = vmatprep.subr.bf16.mxu0 %v1303_v40  ;;  %1006 = vmatprep.subr.bf16.mxu1 %v1303_v40 }
  0x33   :  { %v65_v14 = vmul.f32 %v1279_v13, %v53_v12 }
  0x34   :  { %992 = vmatpush1.bf16.msra.mxu0 %v1308_v45  ;;  %1008 = vmatpush1.bf16.msra.mxu1 %v1308_v45 }
  0x35   :  { %v966_v15 = vmul.f32 -1.442695, %v65_v14  ;;  %994 = vmatprep.subr.bf16.mxu0 %v1311_v46  ;;  %1010 = vmatprep.subr.bf16.mxu1 %v1311_v46 }
  0x37   :  { %1103 = vpow2.f32 %v966_v15 }
  0x38   :  { %996 = vmatpush1.bf16.msra.mxu0 %v1316_v49  ;;  %1012 = vmatpush1.bf16.msra.mxu1 %v1316_v49 }
  0x39   :  { %1014 = vmatprep.subr.bf16.mxu0 %v1290_v29  ;;  %1030 = vmatprep.subr.bf16.mxu1 %v1290_v29 }
  0x41   :  { %v1104_v16 = vpop.eup %1103 }
  0x42   :  { %v69_v17 = vadd.f32 1.0, %v1104_v16 }
  0x44   :  { %1105 = vrcp.f32 %v69_v17 }
  0x4e   :  { %v1106_v21 = vpop.eup %1105 }
  0x4f   :  { %v72_v22 = vmul.f32 %v1106_v21, %v1279_v13 }
  0x51   :  { %v84_v23 = vadd.f32 %v1285_v20, %v72_v22 }
  0x53   :  { %v87_v24 = vrot.slane %v84_v23, 2  ;;  %v85_v50 = vmul.f32 0.0, %v84_v23 }
  0x55   :  { %v89_v25 = vmul.f32 %v87_v24, %v84_v23  ;;  %v241_v24 = vld [vmem:[#allocation2 + $0x8] sm:$0xf] }
  0x57   :  { %91 = vrot.lane.b32.xlu0 %v89_v25, %s1224_s19 }
  0x5b   :  { %96 = vrot.lane.b32.xlu0 %v84_v23, %s1224_s19 }
  0xc9   :  { %v92_v51 = vpop.permute.xlu0 %91 }
  0xca   :  { %v94_v52 = vadd.f32 %v92_v51, %v85_v50 }
  0xcc   :  { %1107 = vtanh.f32 %v94_v52 }
  0xcd   :  { %v97_v54 = vpop.permute.xlu0 %96 }
  0xce   :  { %v98_v55 = vrot.slane %v97_v54, 2 }
  0xd6   :  { %v1108_v53 = vpop.eup %1107 }
  0xd7   :  { %101 = vrot.lane.b32.xlu1 %v1108_v53, %s1224_s19 }
 0x149   :  { %v102_v56 = vpop.permute.xlu1 %101 }
 0x14a   :  { %v1326_v57 = vmul.f32 %v102_v56, %v98_v55 }
 0x14c   :  { %967 = vmatmul.mubr.msk.f32.vlgmr.msra.gmra.mrb[0].mxu0 %vm123_vm1, %v1326_v57 }
 0x14d   :  { %1016 = vmatpush1.bf16.msra.mxu0 %v1292_v33  ;;  %427 = vmatprep.mubr.f32.mxu0 %v1230_v3 }
 0x14e   :  { %1018 = vmatprep.subr.bf16.mxu0 %v1294_v34 }
 0x151   :  { %1020 = vmatpush1.bf16.msra.mxu0 %v1300_v39 }
 0x152   :  { %1022 = vmatprep.subr.bf16.mxu0 %v1303_v40 }
 0x155   :  { %1024 = vmatpush1.bf16.msra.mxu0 %v1308_v45 }
 0x156   :  { %1026 = vmatprep.subr.bf16.mxu0 %v1311_v46 }
 0x159   :  { %1028 = vmatpush1.bf16.msra.mxu0 %v1316_v49 }
 0x15a   :  { %1046 = vmatprep.subr.bf16.mxu0 %v1290_v29 }
 0x21f   :  { %v193_v58 = vpop.f32.mrb[0].mxu0 }
 0x220   :  { %v195_v59 = vpop.f32.mrb[1].mxu0 }
 0x221   :  { %v200_v60 = vcombine.low %v193_v58, %v195_v59 }
 0x223   :  { %v207_v62 = vrot.slane %v200_v60, %v1276_v8 }
 0x225   :  { %v209_v63 = vadd.f32 %v207_v62, %v106_v61 }
 0x227   :  { %v210_v0 = vmul.f32 %v209_v63, %v1279_v13 }
 0x229   :  { %v968_v1 = vmul.f32 -1.442695, %v210_v0 }
 0x22b   :  { %1109 = vpow2.f32 %v968_v1 }
 0x235   :  { %v1110_v2 = vpop.eup %1109 }
 0x236   :  { %v214_v4 = vadd.f32 1.0, %v1110_v2 }
 0x238   :  { %1111 = vrcp.f32 %v214_v4 }
 0x242   :  { %v1112_v5 = vpop.eup %1111 }
 0x243   :  { %v217_v6 = vmul.f32 %v1112_v5, %v1279_v13 }
 0x245   :  { %v218_v7 = vadd.f32 %v217_v6, %v1285_v20 }
 0x247   :  { %230 = vrot.lane.b32.xlu0 %v218_v7, %s1224_s19  ;;  %v221_v9 = vrot.slane %v218_v7, 2  ;;  %v219_v11 = vmul.f32 %v218_v7, %v94_v52 }
 0x249   :  { %v223_v10 = vmul.f32 %v221_v9, %v218_v7 }
 0x24b   :  { %225 = vrot.lane.b32.xlu1 %v223_v10, %s1224_s19 }
 0x2b9   :  { %v231_v16 = vpop.permute.xlu0 %230 }
 0x2ba   :  { %v232_v17 = vrot.slane %v231_v16, 2 }
 0x2bd   :  { %v226_v12 = vpop.permute.xlu1 %225 }
 0x2be   :  { %v228_v14 = vadd.f32 %v226_v12, %v219_v11 }
 0x2c0   :  { %1113 = vtanh.f32 %v228_v14 }
 0x2ca   :  { %v1114_v15 = vpop.eup %1113 }
 0x2cb   :  { %235 = vrot.lane.b32.xlu1 %v1114_v15, %s1224_s19 }
 0x33d   :  { %v236_v18 = vpop.permute.xlu1 %235 }
 0x33e   :  { %v238_v19 = vmul.f32 %v236_v18, %v232_v17 }
 0x340   :  { %969 = vmatmul.mubr.msk.f32.vlgmr.msra.gmra.mrb[0].mxu1 %vm123_vm1, %v238_v19  ;;  %v239_v51 = vmax.f32 %v1326_v57, %v238_v19  ;;  %v359_v57 = vld [vmem:[#allocation2 + $0xc] sm:$0xf]  ;;  %v477_v19 = vld [vmem:[#allocation2 + $0x10] sm:$0xf] }
 0x341   :  { %1032 = vmatpush1.bf16.msra.mxu1 %v1292_v33  ;;  %545 = vmatprep.mubr.f32.mxu1 %v1230_v3 }
 0x342   :  { %1034 = vmatprep.subr.bf16.mxu1 %v1294_v34 }
 0x345   :  { %1036 = vmatpush1.bf16.msra.mxu1 %v1300_v39 }
 0x346   :  { %1038 = vmatprep.subr.bf16.mxu1 %v1303_v40 }
 0x349   :  { %1040 = vmatpush1.bf16.msra.mxu1 %v1308_v45 }
 0x34a   :  { %1042 = vmatprep.subr.bf16.mxu1 %v1311_v46 }
 0x34d   :  { %1044 = vmatpush1.bf16.msra.mxu1 %v1316_v49 }
 0x34e   :  { %1062 = vmatprep.subr.bf16.mxu1 %v1290_v29 }
 0x413   :  { %v311_v21 = vpop.f32.mrb[0].mxu1 }
 0x414   :  { %v313_v22 = vpop.f32.mrb[1].mxu1 }
 0x415   :  { %v318_v23 = vcombine.low %v311_v21, %v313_v22 }
 0x417   :  { %v325_v25 = vrot.slane %v318_v23, %v1276_v8 }
 0x419   :  { %v327_v26 = vadd.f32 %v325_v25, %v241_v24 }
 0x41b   :  { %v328_v27 = vmul.f32 %v327_v26, %v1279_v13 }
 0x41d   :  { %v970_v28 = vmul.f32 -1.442695, %v328_v27 }
 0x41f   :  { %1115 = vpow2.f32 %v970_v28 }
 0x429   :  { %v1116_v30 = vpop.eup %1115 }
 0x42a   :  { %v332_v31 = vadd.f32 1.0, %v1116_v30 }
 0x42c   :  { %1117 = vrcp.f32 %v332_v31 }
 0x436   :  { %v1118_v32 = vpop.eup %1117 }
 0x437   :  { %v335_v35 = vmul.f32 %v1118_v32, %v1279_v13 }
 0x439   :  { %v336_v36 = vadd.f32 %v335_v35, %v1285_v20 }
 0x43b   :  { %348 = vrot.lane.b32.xlu1 %v336_v36, %s1224_s19  ;;  %v339_v37 = vrot.slane %v336_v36, 2  ;;  %v337_v41 = vmul.f32 %v336_v36, %v228_v14 }
 0x43d   :  { %v341_v38 = vmul.f32 %v339_v37, %v336_v36 }
 0x43f   :  { %343 = vrot.lane.b32.xlu0 %v341_v38, %s1224_s19 }
 0x4ad   :  { %v349_v47 = vpop.permute.xlu1 %348 }
 0x4ae   :  { %v350_v48 = vrot.slane %v349_v47, 2 }
 0x4b1   :  { %v344_v42 = vpop.permute.xlu0 %343 }
 0x4b2   :  { %v346_v43 = vadd.f32 %v344_v42, %v337_v41 }
 0x4b4   :  { %1119 = vtanh.f32 %v346_v43 }
 0x4be   :  { %v1120_v44 = vpop.eup %1119 }
 0x4bf   :  { %353 = vrot.lane.b32.xlu0 %v1120_v44, %s1224_s19 }
 0x531   :  { %v354_v50 = vpop.permute.xlu0 %353 }
 0x532   :  { %v356_v52 = vmul.f32 %v354_v50, %v350_v48 }
 0x534   :  { %v1364_v53 = vmax.f32 %v239_v51, %v356_v52  ;;  %971 = vmatmul.mubr.msk.f32.vlgmr.msra.gmra.mrb[2].mxu0 %vm123_vm1, %v356_v52  ;;  %v595_v52 = vld [vmem:[#allocation2 + $0x14] sm:$0xf] }
 0x535   :  { %1048 = vmatpush1.bf16.msra.mxu0 %v1292_v33  ;;  %663 = vmatprep.mubr.f32.mxu0 %v1230_v3 }
 0x536   :  { %1050 = vmatprep.subr.bf16.mxu0 %v1294_v34 }
 0x539   :  { %1052 = vmatpush1.bf16.msra.mxu0 %v1300_v39 }
 0x53a   :  { %1054 = vmatprep.subr.bf16.mxu0 %v1303_v40 }
 0x53d   :  { %1056 = vmatpush1.bf16.msra.mxu0 %v1308_v45 }
 0x53e   :  { %1058 = vmatprep.subr.bf16.mxu0 %v1311_v46 }
 0x541   :  { %1060 = vmatpush1.bf16.msra.mxu0 %v1316_v49 }
 0x542   :  { %1078 = vmatprep.subr.bf16.mxu0 %v1290_v29 }
 0x607   :  { %v429_v54 = vpop.f32.mrb[2].mxu0 }
 0x608   :  { %v431_v55 = vpop.f32.mrb[3].mxu0 }
 0x609   :  { %v436_v56 = vcombine.low %v429_v54, %v431_v55 }
 0x60b   :  { %v443_v58 = vrot.slane %v436_v56, %v1276_v8 }
 0x60d   :  { %v445_v59 = vadd.f32 %v443_v58, %v359_v57 }
 0x60f   :  { %v446_v60 = vmul.f32 %v445_v59, %v1279_v13 }
 0x611   :  { %v972_v61 = vmul.f32 -1.442695, %v446_v60 }
 0x613   :  { %1121 = vpow2.f32 %v972_v61 }
 0x61d   :  { %v1122_v62 = vpop.eup %1121 }
 0x61e   :  { %v450_v63 = vadd.f32 1.0, %v1122_v62 }
 0x620   :  { %1123 = vrcp.f32 %v450_v63 }
 0x62a   :  { %v1124_v0 = vpop.eup %1123 }
 0x62b   :  { %v453_v1 = vmul.f32 %v1124_v0, %v1279_v13 }
 0x62d   :  { %v454_v2 = vadd.f32 %v453_v1, %v1285_v20 }
 0x62f   :  { %466 = vrot.lane.b32.xlu0 %v454_v2, %s1224_s19  ;;  %v457_v29 = vrot.slane %v454_v2, 2  ;;  %v455_v5 = vmul.f32 %v454_v2, %v346_v43 }
 0x631   :  { %v459_v4 = vmul.f32 %v457_v29, %v454_v2 }
 0x633   :  { %461 = vrot.lane.b32.xlu1 %v459_v4, %s1224_s19  ;;  %v713_v4 = vld [vmem:[#allocation2 + $0x18] sm:$0xf] }
 0x6a1   :  { %v467_v10 = vpop.permute.xlu0 %466 }
 0x6a2   :  { %v468_v11 = vrot.slane %v467_v10, 2 }
 0x6a5   :  { %v462_v6 = vpop.permute.xlu1 %461 }
 0x6a6   :  { %v464_v7 = vadd.f32 %v462_v6, %v455_v5 }
 0x6a8   :  { %1125 = vtanh.f32 %v464_v7 }
 0x6b2   :  { %v1126_v9 = vpop.eup %1125 }
 0x6b3   :  { %471 = vrot.lane.b32.xlu1 %v1126_v9, %s1224_s19 }
 0x725   :  { %v472_v12 = vpop.permute.xlu1 %471 }
 0x726   :  { %v474_v14 = vmul.f32 %v472_v12, %v468_v11 }
 0x728   :  { %v475_v15 = vmax.f32 %v1364_v53, %v474_v14  ;;  %973 = vmatmul.mubr.msk.f32.vlgmr.msra.gmra.mrb[2].mxu1 %vm123_vm1, %v474_v14 }
 0x729   :  { %1064 = vmatpush1.bf16.msra.mxu1 %v1292_v33  ;;  %781 = vmatprep.mubr.f32.mxu1 %v1230_v3 }
 0x72a   :  { %1066 = vmatprep.subr.bf16.mxu1 %v1294_v34 }
 0x72d   :  { %1068 = vmatpush1.bf16.msra.mxu1 %v1300_v39 }
 0x72e   :  { %1070 = vmatprep.subr.bf16.mxu1 %v1303_v40 }
 0x731   :  { %1072 = vmatpush1.bf16.msra.mxu1 %v1308_v45 }
 0x732   :  { %1074 = vmatprep.subr.bf16.mxu1 %v1311_v46 }
 0x735   :  { %1076 = vmatpush1.bf16.msra.mxu1 %v1316_v49 }
 0x7fb   :  { %v547_v16 = vpop.f32.mrb[2].mxu1 }
 0x7fc   :  { %v549_v17 = vpop.f32.mrb[3].mxu1 }
 0x7fd   :  { %v554_v18 = vcombine.low %v547_v16, %v549_v17 }
 0x7ff   :  { %v561_v21 = vrot.slane %v554_v18, %v1276_v8 }
 0x801   :  { %v563_v22 = vadd.f32 %v561_v21, %v477_v19 }
 0x803   :  { %v564_v23 = vmul.f32 %v563_v22, %v1279_v13 }
 0x805   :  { %v974_v24 = vmul.f32 -1.442695, %v564_v23 }
 0x807   :  { %1127 = vpow2.f32 %v974_v24 }
 0x811   :  { %v1128_v25 = vpop.eup %1127 }
 0x812   :  { %v568_v26 = vadd.f32 1.0, %v1128_v25 }
 0x814   :  { %1129 = vrcp.f32 %v568_v26 }
 0x81e   :  { %v1130_v27 = vpop.eup %1129 }
 0x81f   :  { %v571_v28 = vmul.f32 %v1130_v27, %v1279_v13 }
 0x821   :  { %v572_v30 = vadd.f32 %v571_v28, %v1285_v20 }
 0x823   :  { %584 = vrot.lane.b32.xlu1 %v572_v30, %s1224_s19  ;;  %v575_v31 = vrot.slane %v572_v30, 2  ;;  %v573_v35 = vmul.f32 %v572_v30, %v464_v7 }
 0x825   :  { %v577_v32 = vmul.f32 %v575_v31, %v572_v30 }
 0x827   :  { %579 = vrot.lane.b32.xlu0 %v577_v32, %s1224_s19  ;;  %v831_v32 = vld [vmem:[#allocation2 + $0x1c] sm:$0xf] }
 0x895   :  { %v585_v41 = vpop.permute.xlu1 %584 }
 0x896   :  { %v586_v42 = vrot.slane %v585_v41, 2 }
 0x899   :  { %v580_v36 = vpop.permute.xlu0 %579 }
 0x89a   :  { %v582_v37 = vadd.f32 %v580_v36, %v573_v35 }
 0x89c   :  { %1131 = vtanh.f32 %v582_v37 }
 0x8a6   :  { %v1132_v38 = vpop.eup %1131 }
 0x8a7   :  { %589 = vrot.lane.b32.xlu0 %v1132_v38, %s1224_s19 }
 0x919   :  { %v590_v43 = vpop.permute.xlu0 %589 }
 0x91a   :  { %v592_v44 = vmul.f32 %v590_v43, %v586_v42 }
 0x91c   :  { %v1400_v47 = vmax.f32 %v475_v15, %v592_v44  ;;  %975 = vmatmul.mubr.msk.f32.vlgmr.msra.gmra.mrb[4].mxu0 %vm123_vm1, %v592_v44 }
 0x91d   :  { %1080 = vmatpush1.bf16.msra.mxu0 %v1292_v33  ;;  %899 = vmatprep.mubr.f32.mxu0 %v1230_v3 }
 0x91e   :  { %1082 = vmatprep.subr.bf16.mxu0 %v1294_v34 }
 0x921   :  { %1084 = vmatpush1.bf16.msra.mxu0 %v1300_v39 }
 0x922   :  { %1086 = vmatprep.subr.bf16.mxu0 %v1303_v40 }
 0x925   :  { %1088 = vmatpush1.bf16.msra.mxu0 %v1308_v45 }
 0x926   :  { %1090 = vmatprep.subr.bf16.mxu0 %v1311_v46 }
 0x929   :  { %1092 = vmatpush1.bf16.msra.mxu0 %v1316_v49 }
 0x9ef   :  { %v665_v48 = vpop.f32.mrb[4].mxu0 }
 0x9f0   :  { %v667_v50 = vpop.f32.mrb[5].mxu0 }
 0x9f1   :  { %v672_v51 = vcombine.low %v665_v48, %v667_v50 }
 0x9f3   :  { %v679_v33 = vrot.slane %v672_v51, %v1276_v8 }
 0x9f5   :  { %v681_v53 = vadd.f32 %v679_v33, %v595_v52 }
 0x9f7   :  { %v682_v3 = vmul.f32 %v681_v53, %v1279_v13 }
 0x9f9   :  { %v976_v34 = vmul.f32 -1.442695, %v682_v3 }
 0x9fb   :  { %1133 = vpow2.f32 %v976_v34 }
 0xa05   :  { %v1134_v39 = vpop.eup %1133 }
 0xa06   :  { %v686_v54 = vadd.f32 1.0, %v1134_v39 }
 0xa08   :  { %1135 = vrcp.f32 %v686_v54 }
 0xa12   :  { %v1136_v40 = vpop.eup %1135 }
 0xa13   :  { %v689_v45 = vmul.f32 %v1136_v40, %v1279_v13 }
 0xa15   :  { %v690_v46 = vadd.f32 %v689_v45, %v1285_v20 }
 0xa17   :  { %702 = vrot.lane.b32.xlu0 %v690_v46, %s1224_s19  ;;  %v693_v49 = vrot.slane %v690_v46, 2  ;;  %v691_v56 = vmul.f32 %v690_v46, %v582_v37 }
 0xa19   :  { %v695_v55 = vmul.f32 %v693_v49, %v690_v46 }
 0xa1b   :  { %697 = vrot.lane.b32.xlu1 %v695_v55, %s1224_s19 }
 0xa89   :  { %v703_v60 = vpop.permute.xlu0 %702 }
 0xa8a   :  { %v704_v61 = vrot.slane %v703_v60, 2 }
 0xa8d   :  { %v698_v57 = vpop.permute.xlu1 %697 }
 0xa8e   :  { %v700_v58 = vadd.f32 %v698_v57, %v691_v56 }
 0xa90   :  { %1137 = vtanh.f32 %v700_v58 }
 0xa9a   :  { %v1138_v59 = vpop.eup %1137 }
 0xa9b   :  { %707 = vrot.lane.b32.xlu1 %v1138_v59, %s1224_s19 }
 0xb0d   :  { %v708_v62 = vpop.permute.xlu1 %707 }
 0xb0e   :  { %v710_v63 = vmul.f32 %v708_v62, %v704_v61 }
 0xb10   :  { %v711_v0 = vmax.f32 %v1400_v47, %v710_v63  ;;  %977 = vmatmul.mubr.msk.f32.vlgmr.msra.gmra.mrb[4].mxu1 %vm123_vm1, %v710_v63 }
 0xbe3   :  { %v783_v1 = vpop.f32.mrb[4].mxu1 }
 0xbe4   :  { %v785_v2 = vpop.f32.mrb[5].mxu1 }
 0xbe5   :  { %v790_v29 = vcombine.low %v783_v1, %v785_v2 }
 0xbe7   :  { %v797_v5 = vrot.slane %v790_v29, %v1276_v8 }
 0xbe9   :  { %v799_v6 = vadd.f32 %v797_v5, %v713_v4 }
 0xbeb   :  { %v800_v7 = vmul.f32 %v799_v6, %v1279_v13 }
 0xbed   :  { %v978_v9 = vmul.f32 -1.442695, %v800_v7 }
 0xbef   :  { %1139 = vpow2.f32 %v978_v9 }
 0xbf9   :  { %v1140_v10 = vpop.eup %1139 }
 0xbfa   :  { %v804_v11 = vadd.f32 1.0, %v1140_v10 }
 0xbfc   :  { %1141 = vrcp.f32 %v804_v11 }
 0xc06   :  { %v1142_v12 = vpop.eup %1141 }
 0xc07   :  { %v807_v14 = vmul.f32 %v1142_v12, %v1279_v13 }
 0xc09   :  { %v808_v15 = vadd.f32 %v807_v14, %v1285_v20 }
 0xc0b   :  { %820 = vrot.lane.b32.xlu1 %v808_v15, %s1224_s19  ;;  %v811_v16 = vrot.slane %v808_v15, 2  ;;  %v809_v18 = vmul.f32 %v808_v15, %v700_v58 }
 0xc0d   :  { %v813_v17 = vmul.f32 %v811_v16, %v808_v15 }
 0xc0f   :  { %815 = vrot.lane.b32.xlu0 %v813_v17, %s1224_s19 }
 0xc7d   :  { %v821_v23 = vpop.permute.xlu1 %820 }
 0xc7e   :  { %v822_v24 = vrot.slane %v821_v23, 2 }
 0xc81   :  { %v816_v19 = vpop.permute.xlu0 %815 }
 0xc82   :  { %v818_v21 = vadd.f32 %v816_v19, %v809_v18 }
 0xc84   :  { %1143 = vtanh.f32 %v818_v21 }
 0xc8e   :  { %v1144_v22 = vpop.eup %1143 }
 0xc8f   :  { %825 = vrot.lane.b32.xlu0 %v1144_v22, %s1224_s19 }
 0xd01   :  { %v826_v25 = vpop.permute.xlu0 %825 }
 0xd02   :  { %v828_v26 = vmul.f32 %v826_v25, %v822_v24 }
 0xd04   :  { %v829_v27 = vmax.f32 %v711_v0, %v828_v26  ;;  %979 = vmatmul.mubr.msk.f32.vlgmr.msra.gmra.mrb[6].mxu0 %vm123_vm1, %v828_v26 }
 0xdd7   :  { %v901_v28 = vpop.f32.mrb[6].mxu0 }
 0xdd8   :  { %v903_v30 = vpop.f32.mrb[7].mxu0 }
 0xdd9   :  { %v908_v31 = vcombine.low %v901_v28, %v903_v30 }
 0xddb   :  { %v915_v35 = vrot.slane %v908_v31, %v1276_v8 }
 0xddd   :  { %v917_v36 = vadd.f32 %v915_v35, %v831_v32 }
 0xddf   :  { %v918_v37 = vmul.f32 %v917_v36, %v1279_v13 }
 0xde1   :  { %v980_v38 = vmul.f32 -1.442695, %v918_v37 }
 0xde3   :  { %1145 = vpow2.f32 %v980_v38 }
 0xded   :  { %v1146_v41 = vpop.eup %1145 }
 0xdee   :  { %v922_v42 = vadd.f32 1.0, %v1146_v41 }
 0xdf0   :  { %1147 = vrcp.f32 %v922_v42 }
 0xdfa   :  { %v1148_v43 = vpop.eup %1147 }
 0xdfb   :  { %v925_v44 = vmul.f32 %v1148_v43, %v1279_v13 }
 0xdfd   :  { %v926_v47 = vadd.f32 %v925_v44, %v1285_v20 }
 0xdff   :  { %938 = vrot.lane.b32.xlu0 %v926_v47, %s1224_s19  ;;  %v929_v48 = vrot.slane %v926_v47, 2  ;;  %v927_v8 = vmul.f32 %v926_v47, %v818_v21 }
 0xe01   :  { %v931_v50 = vmul.f32 %v929_v48, %v926_v47 }
 0xe03   :  { %933 = vrot.lane.b32.xlu1 %v931_v50, %s1224_s19 }
 0xe71   :  { %v939_v53 = vpop.permute.xlu0 %938 }
 0xe72   :  { %v940_v3 = vrot.slane %v939_v53, 2 }
 0xe75   :  { %v934_v51 = vpop.permute.xlu1 %933 }
 0xe76   :  { %v936_v52 = vadd.f32 %v934_v51, %v927_v8 }
 0xe78   :  { %1149 = vtanh.f32 %v936_v52 }
 0xe82   :  { %v1150_v33 = vpop.eup %1149 }
 0xe83   :  { %943 = vrot.lane.b32.xlu1 %v1150_v33, %s1224_s19 }
 0xef5   :  { %v944_v34 = vpop.permute.xlu1 %943 }
 0xef6   :  { %v946_v13 = vmul.f32 %v944_v34, %v940_v3 }
 0xef8   :  { %v947_v20 = vmax.f32 %v829_v27, %v946_v13 }
 0xefa   :  { %949 = vst.msk [vmem:[#allocation7] sm:$0x3] %vm948_vm2, %v947_v20 }
 0xefb   :  { %1206 = shalt.err (!%p1203_p6)
}
 0xefc   :  { %s1207_s12 = scalar_lea.hbm %s1449_s2, 32 }
 0xefd   :  { %p1208_p7 = scmp.ne.s32.totalorder %s1449_s2, %s1207_s12  ;;  %p1211_p8 = scmp.lt.u32.totalorder %s1207_s12, %s1449_s2 }
 0xeff   :  { %p1213_p9 = pnand %p1211_p8, %p1208_p7 }
 0xf01   :  { %1216 = shalt.err (!%p1213_p9)
}
 0xf02   :  { %959 = dma.vmem_to_hbm [thread:$0]  %s957_s8, 32, %s1449_s2, [#allocation4]  }
 0xf03   :  { %1221 = dma.done.wait [#allocation4], 32  }
 0xf04   :  { %1222 = vsyncadd [#allocation4], 4294967264 }
 0xf05   :  { %963 = vsyncpa [#allocation3], 1 }
 0xf06   :  { %964 = vsyncpa [#allocation6], 1 }
 0xf07   :  { %965 = vsyncpa [#allocation4], 1 }

</bundles_post_ra>
